<compile_context>
chip_gen: v7x
topology: tpu7x:2x2x1
jax: 0.10.0
libtpu: 0.0.40
codegen_flags: <defaults>
</compile_context>

<pallas_src>
import jax
import jax.numpy as jnp
from jax import lax
from jax.experimental import pallas as pl
from jax.experimental.pallas import tpu as pltpu


def _banded_weight(w_kwio, w_out):
    """Banded (block-Toeplitz) matrix for a 1-D VALID conv along W.

    w_kwio: (KW, Cin, Cout).  Returns M of shape (W_in*Cin, W_out*Cout) with
        M[(w + kw)*Cin + ci, w*Cout + co] = w_kwio[kw, ci, co]
    so that a lane-packed image row (W_in*Cin,) @ M gives the conv output row
    lane-packed as (W_out*Cout,).
    """
    kw_dim, cin, _ = w_kwio.shape
    eye = jnp.eye(w_out, dtype=w_kwio.dtype)
    mats = []
    for kw in range(kw_dim):
        blk = jnp.kron(eye, w_kwio[kw])                       # (W_out*Cin, W_out*Cout)
        mats.append(jnp.pad(blk, ((kw * cin, (kw_dim - 1 - kw) * cin), (0, 0))))
    return sum(mats)                                          # (W_in*Cin, W_out*Cout)


def _make_block_kernel(H1, H2, KH):
    def kernel(x_ref, w1_ref, b1_ref, w2_ref, b2_ref, o_ref):
        x = x_ref[0]                                          # (H, W*Cin), lane-packed

        # conv1 + ReLU: KH row-shifted matmuls against banded weights.
        y1 = jnp.dot(x[0:H1, :], w1_ref[0], preferred_element_type=jnp.float32)
        for kh in range(1, KH):
            y1 = y1 + jnp.dot(x[kh:kh + H1, :], w1_ref[kh],
                              preferred_element_type=jnp.float32)
        y1 = jnp.maximum(y1 + b1_ref[...], 0.0)               # (H1, W1*Cout)

        # conv2 + ReLU: same trick directly on the lane-packed activation.
        y2 = jnp.dot(y1[0:H2, :], w2_ref[0], preferred_element_type=jnp.float32)
        for kh in range(1, KH):
            y2 = y2 + jnp.dot(y1[kh:kh + H2, :], w2_ref[kh],
                              preferred_element_type=jnp.float32)
        y2 = jnp.maximum(y2 + b2_ref[...], 0.0)               # (H2, W2*Cout)

        # Store in the same (rows, W*Cout) layout -- no in-kernel relayout.
        o_ref[0] = y2.astype(o_ref.dtype)

    return kernel


def block_forward(x_nchw, w1_oihw, b1, w2_oihw, b2):
    """Equivalent of Block.forward: relu(conv2(relu(conv1(x)))), NCHW in/out."""
    B, Cin, H, W = x_nchw.shape
    Cout, _, KH, KW = w1_oihw.shape
    H1, W1 = H - KH + 1, W - KW + 1
    H2, W2 = H1 - KH + 1, W1 - KW + 1
    WC0, WC1, WC2 = W * Cin, W1 * Cout, W2 * Cout

    # Input: NCHW -> NHWC -> lane-packed rows (B, H, W*Cin).  The reshape is
    # free; only the NCHW->NHWC transpose is real layout work (tiny).
    x = jnp.transpose(x_nchw, (0, 2, 3, 1)).reshape(B, H, WC0)

    # Weight-only preprocessing (done once per parameter set in practice).
    w1_hwio = jnp.transpose(w1_oihw, (2, 3, 1, 0))            # (KH, KW, Cin, Cout)
    w2_hwio = jnp.transpose(w2_oihw, (2, 3, 1, 0))            # (KH, KW, Cout, Cout)
    w1_eff = jnp.stack([_banded_weight(w1_hwio[kh], W1) for kh in range(KH)])
    w2_eff = jnp.stack([_banded_weight(w2_hwio[kh], W2) for kh in range(KH)])
    b1_eff = jnp.tile(b1, W1).reshape(1, WC1)
    b2_eff = jnp.tile(b2, W2).reshape(1, WC2)

    kernel = _make_block_kernel(H1, H2, KH)

    out = pl.pallas_call(
        kernel,
        out_shape=jax.ShapeDtypeStruct((B, H2, WC2), x.dtype),
        grid_spec=pltpu.PrefetchScalarGridSpec(
            num_scalar_prefetch=0,
            grid=(B,),
            in_specs=[
                pl.BlockSpec((1, H, WC0), lambda b: (b, 0, 0)),
                pl.BlockSpec((KH, WC0, WC1), lambda b: (0, 0, 0)),
                pl.BlockSpec((1, WC1), lambda b: (0, 0)),
                pl.BlockSpec((KH, WC1, WC2), lambda b: (0, 0, 0)),
                pl.BlockSpec((1, WC2), lambda b: (0, 0)),
            ],
            out_specs=pl.BlockSpec((1, H2, WC2), lambda b: (b, 0, 0)),
        ),
        compiler_params=pltpu.CompilerParams(
            dimension_semantics=("parallel",)),          # 2 TCs on v7x; seq elsewhere
    )(x, w1_eff, b1_eff, w2_eff, b2_eff)

    out_nhwc = out.reshape(B, H2, W2, Cout)
    return jnp.transpose(out_nhwc, (0, 3, 1, 2))              # back to NCHW


def _reference(x_nchw, w1_oihw, b1, w2_oihw, b2):
    """Pure-JAX reference in NCHW/OIHW (mirrors PyTorch exactly)."""
    dn = ("NCHW", "OIHW", "NCHW")
    y = lax.conv_general_dilated(x_nchw, w1_oihw, (1, 1), "VALID",
                                 dimension_numbers=dn)
    y = jnp.maximum(y + b1[None, :, None, None], 0.0)
    y = lax.conv_general_dilated(y, w2_oihw, (1, 1), "VALID",
                                 dimension_numbers=dn)
    return jnp.maximum(y + b2[None, :, None, None], 0.0)


if __name__ == "__main__":
    B, Cin, Cout, H, W, K = 2, 4, 8, 16, 16, 3

    key = jax.random.PRNGKey(0)
    kx, kw1, kb1, kw2, kb2 = jax.random.split(key, 5)

    x = jax.random.normal(kx, (B, Cin, H, W), dtype=jnp.float32)

    # Deterministic PyTorch-like uniform init: U(-1/sqrt(fan_in), 1/sqrt(fan_in))
    fan1 = Cin * K * K
    fan2 = Cout * K * K
    w1 = jax.random.uniform(kw1, (Cout, Cin, K, K), jnp.float32,
                            -1.0 / fan1 ** 0.5, 1.0 / fan1 ** 0.5)
    b1 = jax.random.uniform(kb1, (Cout,), jnp.float32,
                            -1.0 / fan1 ** 0.5, 1.0 / fan1 ** 0.5)
    w2 = jax.random.uniform(kw2, (Cout, Cout, K, K), jnp.float32,
                            -1.0 / fan2 ** 0.5, 1.0 / fan2 ** 0.5)
    b2 = jax.random.uniform(kb2, (Cout,), jnp.float32,
                            -1.0 / fan2 ** 0.5, 1.0 / fan2 ** 0.5)

    fwd = jax.jit(block_forward)
    out = jax.block_until_ready(fwd(x, w1, b1, w2, b2))

    ref = _reference(x, w1, b1, w2, b2)
    assert out.shape == (B, Cout, H - 4, W - 4), out.shape
    assert jnp.allclose(out, ref, rtol=1e-4, atol=1e-4), "mismatch vs reference"

    print("KERNEL_OK")
</pallas_src>

<mosaic_0001>
module attributes {stable_mosaic.version = 11 : i64} {
  func.func @kernel(%arg0: i32, %arg1: memref<1x16x64xf32, #tpu.memory_space<vmem>>, %arg2: memref<3x64x112xf32, #tpu.memory_space<vmem>>, %arg3: memref<1x112xf32, #tpu.memory_space<vmem>>, %arg4: memref<3x112x96xf32, #tpu.memory_space<vmem>>, %arg5: memref<1x96xf32, #tpu.memory_space<vmem>>, %arg6: memref<1x12x96xf32, #tpu.memory_space<vmem>>) attributes {dimension_semantics = [#tpu.dimension_semantics<parallel>], iteration_bounds = array<i64: 2>, scalar_prefetch = 0 : i64, scratch_operands = 0 : i64, tpu.core_type = #tpu.core_type<tc>, window_params = [{transform_indices = @transform_0, window_bounds = array<i64: 1, 16, 64>}, {pipeline_mode = #tpu.pipeline_mode<synchronous>, transform_indices = @transform_1, window_bounds = array<i64: 3, 64, 112>}, {pipeline_mode = #tpu.pipeline_mode<synchronous>, transform_indices = @transform_2, window_bounds = array<i64: 1, 112>}, {pipeline_mode = #tpu.pipeline_mode<synchronous>, transform_indices = @transform_3, window_bounds = array<i64: 3, 112, 96>}, {pipeline_mode = #tpu.pipeline_mode<synchronous>, transform_indices = @transform_4, window_bounds = array<i64: 1, 96>}, {transform_indices = @transform_5, window_bounds = array<i64: 1, 12, 96>}]} {
    %c0 = arith.constant 0 : index
    %c0_0 = arith.constant 0 : index
    %c0_1 = arith.constant 0 : index
    %0 = vector.load %arg1[%c0, %c0_0, %c0_1] : memref<1x16x64xf32, #tpu.memory_space<vmem>>, vector<1x16x64xf32>
    %1 = vector.shape_cast %0 : vector<1x16x64xf32> to vector<16x64xf32>
    %2 = vector.extract_strided_slice %1 {offsets = [0, 0], sizes = [14, 64], strides = [1, 1]} : vector<16x64xf32> to vector<14x64xf32>
    %c0_2 = arith.constant 0 : index
    %c0_3 = arith.constant 0 : index
    %c0_4 = arith.constant 0 : index
    %3 = vector.load %arg2[%c0_2, %c0_3, %c0_4] : memref<3x64x112xf32, #tpu.memory_space<vmem>>, vector<1x64x112xf32>
    %4 = vector.shape_cast %3 : vector<1x64x112xf32> to vector<64x112xf32>
    %cst = arith.constant dense<0.000000e+00> : vector<14x112xf32>
    %5 = tpu.matmul %2, %4, %cst {dimension_numbers = #tpu.dot_dimension_numbers<[1], [0], [0], [1], [0, 0, 1, 1], [], []>} : vector<14x64xf32>, vector<64x112xf32>, vector<14x112xf32> -> vector<14x112xf32>
    %6 = vector.extract_strided_slice %1 {offsets = [1, 0], sizes = [14, 64], strides = [1, 1]} : vector<16x64xf32> to vector<14x64xf32>
    %c1 = arith.constant 1 : index
    %c0_5 = arith.constant 0 : index
    %c0_6 = arith.constant 0 : index
    %7 = vector.load %arg2[%c1, %c0_5, %c0_6] : memref<3x64x112xf32, #tpu.memory_space<vmem>>, vector<1x64x112xf32>
    %8 = vector.shape_cast %7 : vector<1x64x112xf32> to vector<64x112xf32>
    %cst_7 = arith.constant dense<0.000000e+00> : vector<14x112xf32>
    %9 = tpu.matmul %6, %8, %cst_7 {dimension_numbers = #tpu.dot_dimension_numbers<[1], [0], [0], [1], [0, 0, 1, 1], [], []>} : vector<14x64xf32>, vector<64x112xf32>, vector<14x112xf32> -> vector<14x112xf32>
    %10 = arith.addf %5, %9 : vector<14x112xf32>
    %11 = vector.extract_strided_slice %1 {offsets = [2, 0], sizes = [14, 64], strides = [1, 1]} : vector<16x64xf32> to vector<14x64xf32>
    %c2 = arith.constant 2 : index
    %c0_8 = arith.constant 0 : index
    %c0_9 = arith.constant 0 : index
    %12 = vector.load %arg2[%c2, %c0_8, %c0_9] : memref<3x64x112xf32, #tpu.memory_space<vmem>>, vector<1x64x112xf32>
    %13 = vector.shape_cast %12 : vector<1x64x112xf32> to vector<64x112xf32>
    %cst_10 = arith.constant dense<0.000000e+00> : vector<14x112xf32>
    %14 = tpu.matmul %11, %13, %cst_10 {dimension_numbers = #tpu.dot_dimension_numbers<[1], [0], [0], [1], [0, 0, 1, 1], [], []>} : vector<14x64xf32>, vector<64x112xf32>, vector<14x112xf32> -> vector<14x112xf32>
    %15 = arith.addf %10, %14 : vector<14x112xf32>
    %c0_11 = arith.constant 0 : index
    %c0_12 = arith.constant 0 : index
    %16 = vector.load %arg3[%c0_11, %c0_12] : memref<1x112xf32, #tpu.memory_space<vmem>>, vector<1x112xf32>
    %17 = vector.broadcast %16 : vector<1x112xf32> to vector<14x112xf32>
    %18 = arith.addf %15, %17 : vector<14x112xf32>
    %cst_13 = arith.constant 0.000000e+00 : f32
    %19 = vector.broadcast %cst_13 : f32 to vector<14x112xf32>
    %20 = arith.maximumf %18, %19 : vector<14x112xf32>
    %21 = vector.extract_strided_slice %20 {offsets = [0, 0], sizes = [12, 112], strides = [1, 1]} : vector<14x112xf32> to vector<12x112xf32>
    %c0_14 = arith.constant 0 : index
    %c0_15 = arith.constant 0 : index
    %c0_16 = arith.constant 0 : index
    %22 = vector.load %arg4[%c0_14, %c0_15, %c0_16] : memref<3x112x96xf32, #tpu.memory_space<vmem>>, vector<1x112x96xf32>
    %23 = vector.shape_cast %22 : vector<1x112x96xf32> to vector<112x96xf32>
    %cst_17 = arith.constant dense<0.000000e+00> : vector<12x96xf32>
    %24 = tpu.matmul %21, %23, %cst_17 {dimension_numbers = #tpu.dot_dimension_numbers<[1], [0], [0], [1], [0, 0, 1, 1], [], []>} : vector<12x112xf32>, vector<112x96xf32>, vector<12x96xf32> -> vector<12x96xf32>
    %25 = vector.extract_strided_slice %20 {offsets = [1, 0], sizes = [12, 112], strides = [1, 1]} : vector<14x112xf32> to vector<12x112xf32>
    %c1_18 = arith.constant 1 : index
    %c0_19 = arith.constant 0 : index
    %c0_20 = arith.constant 0 : index
    %26 = vector.load %arg4[%c1_18, %c0_19, %c0_20] : memref<3x112x96xf32, #tpu.memory_space<vmem>>, vector<1x112x96xf32>
    %27 = vector.shape_cast %26 : vector<1x112x96xf32> to vector<112x96xf32>
    %cst_21 = arith.constant dense<0.000000e+00> : vector<12x96xf32>
    %28 = tpu.matmul %25, %27, %cst_21 {dimension_numbers = #tpu.dot_dimension_numbers<[1], [0], [0], [1], [0, 0, 1, 1], [], []>} : vector<12x112xf32>, vector<112x96xf32>, vector<12x96xf32> -> vector<12x96xf32>
    %29 = arith.addf %24, %28 : vector<12x96xf32>
    %30 = vector.extract_strided_slice %20 {offsets = [2, 0], sizes = [12, 112], strides = [1, 1]} : vector<14x112xf32> to vector<12x112xf32>
    %c2_22 = arith.constant 2 : index
    %c0_23 = arith.constant 0 : index
    %c0_24 = arith.constant 0 : index
    %31 = vector.load %arg4[%c2_22, %c0_23, %c0_24] : memref<3x112x96xf32, #tpu.memory_space<vmem>>, vector<1x112x96xf32>
    %32 = vector.shape_cast %31 : vector<1x112x96xf32> to vector<112x96xf32>
    %cst_25 = arith.constant dense<0.000000e+00> : vector<12x96xf32>
    %33 = tpu.matmul %30, %32, %cst_25 {dimension_numbers = #tpu.dot_dimension_numbers<[1], [0], [0], [1], [0, 0, 1, 1], [], []>} : vector<12x112xf32>, vector<112x96xf32>, vector<12x96xf32> -> vector<12x96xf32>
    %34 = arith.addf %29, %33 : vector<12x96xf32>
    %c0_26 = arith.constant 0 : index
    %c0_27 = arith.constant 0 : index
    %35 = vector.load %arg5[%c0_26, %c0_27] : memref<1x96xf32, #tpu.memory_space<vmem>>, vector<1x96xf32>
    %36 = vector.broadcast %35 : vector<1x96xf32> to vector<12x96xf32>
    %37 = arith.addf %34, %36 : vector<12x96xf32>
    %cst_28 = arith.constant 0.000000e+00 : f32
    %38 = vector.broadcast %cst_28 : f32 to vector<12x96xf32>
    %39 = arith.maximumf %37, %38 : vector<12x96xf32>
    %c0_29 = arith.constant 0 : index
    %c0_30 = arith.constant 0 : index
    %c0_31 = arith.constant 0 : index
    %40 = vector.load %arg6[%c0_29, %c0_30, %c0_31] : memref<1x12x96xf32, #tpu.memory_space<vmem>>, vector<1x12x96xf32>
    %41 = vector.shape_cast %40 : vector<1x12x96xf32> to vector<12x96xf32>
    %42 = vector.shape_cast %39 : vector<12x96xf32> to vector<1x12x96xf32>
    tpu.vector_store %arg6[%c0_29, %c0_30, %c0_31], %42 {strides = array<i32>} : memref<1x12x96xf32, #tpu.memory_space<vmem>>, vector<1x12x96xf32>,
    return
  }
  func.func @transform_0(%arg0: i32) -> (i32, i32, i32) {
    %c0_i32 = arith.constant 0 : i32
    %c0_i32_0 = arith.constant 0 : i32
    %c0_i32_1 = arith.constant 0 : i32
    return %arg0, %c0_i32, %c0_i32_0 : i32, i32, i32
  }
  func.func @transform_1(%arg0: i32) -> (i32, i32, i32) {
    %c0_i32 = arith.constant 0 : i32
    %c0_i32_0 = arith.constant 0 : i32
    %c0_i32_1 = arith.constant 0 : i32
    %c0_i32_2 = arith.constant 0 : i32
    return %c0_i32, %c0_i32_0, %c0_i32_1 : i32, i32, i32
  }
  func.func @transform_2(%arg0: i32) -> (i32, i32) {
    %c0_i32 = arith.constant 0 : i32
    %c0_i32_0 = arith.constant 0 : i32
    %c0_i32_1 = arith.constant 0 : i32
    return %c0_i32, %c0_i32_0 : i32, i32
  }
  func.func @transform_3(%arg0: i32) -> (i32, i32, i32) {
    %c0_i32 = arith.constant 0 : i32
    %c0_i32_0 = arith.constant 0 : i32
    %c0_i32_1 = arith.constant 0 : i32
    %c0_i32_2 = arith.constant 0 : i32
    return %c0_i32, %c0_i32_0, %c0_i32_1 : i32, i32, i32
  }
  func.func @transform_4(%arg0: i32) -> (i32, i32) {
    %c0_i32 = arith.constant 0 : i32
    %c0_i32_0 = arith.constant 0 : i32
    %c0_i32_1 = arith.constant 0 : i32
    return %c0_i32, %c0_i32_0 : i32, i32
  }
  func.func @transform_5(%arg0: i32) -> (i32, i32, i32) {
    %c0_i32 = arith.constant 0 : i32
    %c0_i32_0 = arith.constant 0 : i32
    %c0_i32_1 = arith.constant 0 : i32
    return %arg0, %c0_i32, %c0_i32_0 : i32, i32, i32
  }
}

</mosaic_0001>

<bundles_post_ra>
// kernel: tile.13
= control target key start
LH: loop header
LB: loop body
LE: loop exit
PB: predicated region body
PF: predicated region fallthrough
CT: control target
= control target key end

     0   :  { %s28_s0 = inlined_call_operand.vmem [shape: f32[8], index: 0, kind: input, shape index: {}]   ;;  %s29_s1 = inlined_call_operand.vmem [shape: f32[14,8], index: 1, kind: output, shape index: {}]  }
   0x1   :  { %v4_v0 = vld [vmem:[%s28_s0] ss:$0 sm:$0xff] }
   0x2   :  { %5 = vst [vmem:[%s29_s1] sm:$0xff] %v4_v0  ;;  %8 = vst [vmem:[%s29_s1 + $0x8] sm:$0xff] %v4_v0 }

// kernel: tile.14
= control target key start
LH: loop header
LB: loop body
LE: loop exit
PB: predicated region body
PF: predicated region fallthrough
CT: control target
= control target key end

     0   :  { %s115_s10 = smov 104   ;;  %s116_s11 = smov 88   ;;  %vm3_vm0 = vcmask 64512   ;;  %vm9_vm1 = vcmask 917312   ;;  %vm15_vm2 = vcmask 851712   ;;  %vm21_vm3 = vcmask 786112   ;;  %s183_s0 = inlined_call_operand.vmem [shape: f32[14,8], index: 0, kind: input, shape index: {}]   ;;  %s184_s1 = inlined_call_operand.vmem [shape: f32[1,112], index: 1, kind: output, shape index: {}]  }
   0x1   :  { %v89_v0 = vld [vmem:[%s183_s0 + $0xd] sm:$0x1]   ;;  %v91_v1 = vld [vmem:[%s183_s0 + $0xb] sm:$0x1]   ;;  %v90_v2 = vld [vmem:[%s183_s0 + $0xc] sm:$0x1]  }
   0x2   :  { %7 = vrot.lane.b32.xlu0 %v89_v0, %s115_s10  ;;  %19 = vrot.lane.b32.xlu1 %v91_v1, %s116_s11  ;;  %v92_v3 = vld [vmem:[%s183_s0 + $0xa] sm:$0x1]   ;;  %s117_s16 = smov 96   ;;  %s118_s17 = smov 80   ;;  %v93_v4 = vld [vmem:[%s183_s0 + $0x9] sm:$0x1]  }
   0x3   :  { %v94_v5 = vld [vmem:[%s183_s0 + $0x8] sm:$0x1]   ;;  %v2_v6 = vld [vmem:[%s183_s0] sm:$0x1]   ;;  %s119_s24 = smov 72   ;;  %s120_s25 = smov 64  }
   0x4   :  { %4 = vst.msk [vmem:[#allocation0] sm:$0x1] %vm3_vm0, %v2_v6   ;;  %v95_v7 = vld [vmem:[%s183_s0 + $0x7] sm:$0x1]   ;;  %v96_v8 = vld [vmem:[%s183_s0 + $0x6] sm:$0x1]  }
   0x5   :  { %s121_s30 = smov 56   ;;  %s122_s2 = smov 48   ;;  %v97_v9 = vld [vmem:[%s183_s0 + $0x5] sm:$0x1]   ;;  %v98_v10 = vld [vmem:[%s183_s0 + $0x4] sm:$0x1]  }
   0x6   :  { %13 = vrot.lane.b32.xlu0 %v90_v2, %s117_s16  ;;  %25 = vrot.lane.b32.xlu1 %v92_v3, %s118_s17  ;;  %s123_s7 = smov 40   ;;  %s124_s8 = smov 32   ;;  %v99_v11 = vld [vmem:[%s183_s0 + $0x3] sm:$0x1]   ;;  %v100_v12 = vld [vmem:[%s183_s0 + $0x2] sm:$0x1]  }
   0x7   :  { %s125_s13 = smov 24   ;;  %s126_s14 = smov 16   ;;  %v101_v13 = vld [vmem:[%s183_s0 + $0x1] sm:$0x1]   ;;  %vm27_vm4 = vcmask 720512   ;;  %vm33_vm5 = vcmask 654912  }
   0x8   :  { %s127_s0 = smov 8   ;;  %vm39_vm6 = vcmask 589312   ;;  %vm45_vm7 = vcmask 523712   ;;  %vm51_vm8 = vcmask 458112   ;;  %vm57_vm9 = vcmask 392512  }
   0x9   :  { %vm63_vm10 = vcmask 326912   ;;  %vm69_vm11 = vcmask 261312   ;;  %vm75_vm12 = vcmask 195712   ;;  %vm81_vm13 = vcmask 130112  }
   0xa   :  { %31 = vrot.lane.b32.xlu0 %v93_v4, %s119_s24  ;;  %37 = vrot.lane.b32.xlu1 %v94_v5, %s120_s25 }
   0xe   :  { %43 = vrot.lane.b32.xlu0 %v95_v7, %s121_s30  ;;  %49 = vrot.lane.b32.xlu1 %v96_v8, %s122_s2 }
  0x12   :  { %55 = vrot.lane.b32.xlu0 %v97_v9, %s123_s7  ;;  %61 = vrot.lane.b32.xlu1 %v98_v10, %s124_s8 }
  0x16   :  { %67 = vrot.lane.b32.xlu0 %v99_v11, %s125_s13  ;;  %73 = vrot.lane.b32.xlu1 %v100_v12, %s126_s14 }
  0x1a   :  { %79 = vrot.lane.b32.xlu0 %v101_v13, %s127_s0 }
  0x74   :  { %v8_v14 = vpop.permute.xlu0 %7   ;;  %v20_v15 = vpop.permute.xlu1 %19  }
  0x75   :  { %10 = vst.msk [vmem:[#allocation0] sm:$0x1] %vm9_vm1, %v8_v14  }
  0x78   :  { %v14_v16 = vpop.permute.xlu0 %13   ;;  %v26_v17 = vpop.permute.xlu1 %25  }
  0x79   :  { %16 = vst.msk [vmem:[#allocation0] sm:$0x1] %vm15_vm2, %v14_v16  }
  0x7a   :  { %22 = vst.msk [vmem:[#allocation0] sm:$0x1] %vm21_vm3, %v20_v15  }
  0x7b   :  { %28 = vst.msk [vmem:[#allocation0] sm:$0x1] %vm27_vm4, %v26_v17  }
  0x7c   :  { %v32_v18 = vpop.permute.xlu0 %31   ;;  %v38_v19 = vpop.permute.xlu1 %37  }
  0x7d   :  { %34 = vst.msk [vmem:[#allocation0] sm:$0x1] %vm33_vm5, %v32_v18  }
  0x7e   :  { %40 = vst.msk [vmem:[#allocation0] sm:$0x1] %vm39_vm6, %v38_v19  }
  0x80   :  { %v44_v20 = vpop.permute.xlu0 %43   ;;  %v50_v21 = vpop.permute.xlu1 %49  }
  0x81   :  { %46 = vst.msk [vmem:[#allocation0] sm:$0x1] %vm45_vm7, %v44_v20  }
  0x82   :  { %52 = vst.msk [vmem:[#allocation0] sm:$0x1] %vm51_vm8, %v50_v21  }
  0x84   :  { %v56_v22 = vpop.permute.xlu0 %55   ;;  %v62_v23 = vpop.permute.xlu1 %61  }
  0x85   :  { %58 = vst.msk [vmem:[#allocation0] sm:$0x1] %vm57_vm9, %v56_v22  }
  0x86   :  { %64 = vst.msk [vmem:[#allocation0] sm:$0x1] %vm63_vm10, %v62_v23  }
  0x88   :  { %v68_v24 = vpop.permute.xlu0 %67   ;;  %v74_v25 = vpop.permute.xlu1 %73  }
  0x89   :  { %70 = vst.msk [vmem:[#allocation0] sm:$0x1] %vm69_vm11, %v68_v24  }
  0x8a   :  { %76 = vst.msk [vmem:[#allocation0] sm:$0x1] %vm75_vm12, %v74_v25  }
  0x8c   :  { %v80_v26 = vpop.permute.xlu0 %79  }
  0x8d   :  { %82 = vst.msk [vmem:[#allocation0] sm:$0x1] %vm81_vm13, %v80_v26  }
  0x94   :  { %v86_v27 = vld [vmem:[#allocation0] sm:$0x1] }
  0x95   :  { %88 = vst [vmem:[%s184_s1] sm:$0x1] %v86_v27 }

// kernel: tile.18
= control target key start
LH: loop header
LB: loop body
LE: loop exit
PB: predicated region body
PF: predicated region fallthrough
CT: control target
= control target key end

     0   :  { %s28_s0 = inlined_call_operand.vmem [shape: f32[8], index: 0, kind: input, shape index: {}]   ;;  %s29_s1 = inlined_call_operand.vmem [shape: f32[12,8], index: 1, kind: output, shape index: {}]  }
   0x1   :  { %v4_v0 = vld [vmem:[%s28_s0] ss:$0 sm:$0xff] }
   0x2   :  { %5 = vst [vmem:[%s29_s1] sm:$0xff] %v4_v0  ;;  %8 = vst [vmem:[%s29_s1 + $0x8] sm:$0xff] %v4_v0 }

// kernel: tile.19
= control target key start
LH: loop header
LB: loop body
LE: loop exit
PB: predicated region body
PF: predicated region fallthrough
CT: control target
= control target key end

     0   :  { %s99_s10 = smov 88   ;;  %s100_s11 = smov 72   ;;  %vm3_vm0 = vcmask 64512   ;;  %vm9_vm1 = vcmask 786112   ;;  %vm15_vm2 = vcmask 720512   ;;  %vm21_vm3 = vcmask 654912   ;;  %s159_s0 = inlined_call_operand.vmem [shape: f32[12,8], index: 0, kind: input, shape index: {}]   ;;  %s160_s1 = inlined_call_operand.vmem [shape: f32[1,96], index: 1, kind: output, shape index: {}]  }
   0x1   :  { %v77_v0 = vld [vmem:[%s159_s0 + $0xb] sm:$0x1]   ;;  %v79_v1 = vld [vmem:[%s159_s0 + $0x9] sm:$0x1]   ;;  %v78_v2 = vld [vmem:[%s159_s0 + $0xa] sm:$0x1]  }
   0x2   :  { %7 = vrot.lane.b32.xlu0 %v77_v0, %s99_s10  ;;  %19 = vrot.lane.b32.xlu1 %v79_v1, %s100_s11  ;;  %v80_v3 = vld [vmem:[%s159_s0 + $0x8] sm:$0x1]   ;;  %s101_s16 = smov 80   ;;  %s102_s17 = smov 64   ;;  %v81_v4 = vld [vmem:[%s159_s0 + $0x7] sm:$0x1]  }
   0x3   :  { %v2_v5 = vld [vmem:[%s159_s0] sm:$0x1]   ;;  %v82_v6 = vld [vmem:[%s159_s0 + $0x6] sm:$0x1]   ;;  %s103_s24 = smov 56   ;;  %s104_s25 = smov 48  }
   0x4   :  { %4 = vst.msk [vmem:[#allocation0] sm:$0x1] %vm3_vm0, %v2_v5   ;;  %v83_v7 = vld [vmem:[%s159_s0 + $0x5] sm:$0x1]   ;;  %v84_v8 = vld [vmem:[%s159_s0 + $0x4] sm:$0x1]  }
   0x5   :  { %s105_s30 = smov 40   ;;  %s106_s2 = smov 32   ;;  %v85_v9 = vld [vmem:[%s159_s0 + $0x3] sm:$0x1]   ;;  %v86_v10 = vld [vmem:[%s159_s0 + $0x2] sm:$0x1]  }
   0x6   :  { %13 = vrot.lane.b32.xlu0 %v78_v2, %s101_s16  ;;  %25 = vrot.lane.b32.xlu1 %v80_v3, %s102_s17  ;;  %s107_s7 = smov 24   ;;  %s108_s8 = smov 16   ;;  %v87_v11 = vld [vmem:[%s159_s0 + $0x1] sm:$0x1]   ;;  %vm27_vm4 = vcmask 589312   ;;  %vm33_vm5 = vcmask 523712  }
   0x7   :  { %s109_s0 = smov 8   ;;  %vm39_vm6 = vcmask 458112   ;;  %vm45_vm7 = vcmask 392512   ;;  %vm51_vm8 = vcmask 326912   ;;  %vm57_vm9 = vcmask 261312  }
   0x8   :  { %vm63_vm10 = vcmask 195712   ;;  %vm69_vm11 = vcmask 130112  }
   0xa   :  { %31 = vrot.lane.b32.xlu0 %v81_v4, %s103_s24  ;;  %37 = vrot.lane.b32.xlu1 %v82_v6, %s104_s25 }
   0xe   :  { %43 = vrot.lane.b32.xlu0 %v83_v7, %s105_s30  ;;  %49 = vrot.lane.b32.xlu1 %v84_v8, %s106_s2 }
  0x12   :  { %55 = vrot.lane.b32.xlu0 %v85_v9, %s107_s7  ;;  %61 = vrot.lane.b32.xlu1 %v86_v10, %s108_s8 }
  0x16   :  { %67 = vrot.lane.b32.xlu0 %v87_v11, %s109_s0 }
  0x74   :  { %v8_v12 = vpop.permute.xlu0 %7   ;;  %v20_v13 = vpop.permute.xlu1 %19  }
  0x75   :  { %10 = vst.msk [vmem:[#allocation0] sm:$0x1] %vm9_vm1, %v8_v12  }
  0x78   :  { %v14_v14 = vpop.permute.xlu0 %13   ;;  %v26_v15 = vpop.permute.xlu1 %25  }
  0x79   :  { %16 = vst.msk [vmem:[#allocation0] sm:$0x1] %vm15_vm2, %v14_v14  }
  0x7a   :  { %22 = vst.msk [vmem:[#allocation0] sm:$0x1] %vm21_vm3, %v20_v13  }
  0x7b   :  { %28 = vst.msk [vmem:[#allocation0] sm:$0x1] %vm27_vm4, %v26_v15  }
  0x7c   :  { %v32_v16 = vpop.permute.xlu0 %31   ;;  %v38_v17 = vpop.permute.xlu1 %37  }
  0x7d   :  { %34 = vst.msk [vmem:[#allocation0] sm:$0x1] %vm33_vm5, %v32_v16  }
  0x7e   :  { %40 = vst.msk [vmem:[#allocation0] sm:$0x1] %vm39_vm6, %v38_v17  }
  0x80   :  { %v44_v18 = vpop.permute.xlu0 %43   ;;  %v50_v19 = vpop.permute.xlu1 %49  }
  0x81   :  { %46 = vst.msk [vmem:[#allocation0] sm:$0x1] %vm45_vm7, %v44_v18  }
  0x82   :  { %52 = vst.msk [vmem:[#allocation0] sm:$0x1] %vm51_vm8, %v50_v19  }
  0x84   :  { %v56_v20 = vpop.permute.xlu0 %55   ;;  %v62_v21 = vpop.permute.xlu1 %61  }
  0x85   :  { %58 = vst.msk [vmem:[#allocation0] sm:$0x1] %vm57_vm9, %v56_v20  }
  0x86   :  { %64 = vst.msk [vmem:[#allocation0] sm:$0x1] %vm63_vm10, %v62_v21  }
  0x88   :  { %v68_v22 = vpop.permute.xlu0 %67  }
  0x89   :  { %70 = vst.msk [vmem:[#allocation0] sm:$0x1] %vm69_vm11, %v68_v22  }
  0x90   :  { %v74_v23 = vld [vmem:[#allocation0] sm:$0x1] }
  0x91   :  { %76 = vst [vmem:[%s160_s1] sm:$0x1] %v74_v23 }

// kernel: block_forward.1
= control target key start
LH: loop header
LB: loop body
LE: loop exit
PB: predicated region body
PF: predicated region fallthrough
CT: control target
= control target key end

     0   :  { %s1361_s18 = smov 0   ;;  %s1610_s0 = inlined_call_operand.vmem [shape: f32[2,16,64], index: 0, kind: input, shape index: {}]   ;;  %s1611_s1 = inlined_call_operand.vmem [shape: f32[3,64,112], index: 1, kind: input, shape index: {}]   ;;  %s1612_s2 = inlined_call_operand.vmem [shape: f32[1,112], index: 2, kind: input, shape index: {}]   ;;  %s1613_s3 = inlined_call_operand.vmem [shape: f32[3,112,96], index: 3, kind: input, shape index: {}]   ;;  %s1614_s4 = inlined_call_operand.vmem [shape: f32[1,96], index: 4, kind: input, shape index: {}]   ;;  %s1615_s5 = inlined_call_operand.vmem [shape: f32[2,12,96], index: 5, kind: output, shape index: {}]  }
   0x1 LB: > { %s876_s19 = sadd.s32 4294967295, %s1329_s18   ;;  %p880_p0 = scmp.ge.s32.totalorder %s1329_s18, 1  ;;  %s1329_s18 = sphi %s1361_s18, %s15_s18  }
   0x2   : > { %p187_p1 = scmp.lt.s32.totalorder %s1329_s18, 3 }
   0x4   : > { %p188_p2 = pnand %p880_p0, %p187_p1 }
   0x5   : > { %v227_v0 = vld [vmem:[%s1611_s1] sm:$0xff] (!%p188_p2)  ;;  %v228_v1 = vld [vmem:[%s1611_s1 + $0x8] sm:$0xff] (!%p188_p2)  ;;  %v229_v2 = vld [vmem:[%s1611_s1 + $0x10] sm:$0xff] (!%p188_p2)  ;;  %p215_p3 = scmp.lt.s32.totalorder (!%p188_p2), %s876_s19, 1  ;;  %vm250_vm0 = vcmask (!%p188_p2), 523264   ;;  %vm246_vm1 = vcmask (!%p188_p2), 1046528  }
   0x6   : > { %191 = sbr.rel (%p188_p2) target bundleno = 508 (0x1fc), region = 40  ;;  %v1191_v3 = vpack.c.bf16 (!%p188_p2), %v228_v1, %v227_v0  ;;  %v230_v4 = vld [vmem:[%s1611_s1 + $0x18] sm:$0xff] (!%p188_p2)  ;;  %v231_v6 = vld [vmem:[%s1611_s1 + $0x20] sm:$0xff] (!%p188_p2)  ;;  %v232_v7 = vld [vmem:[%s1611_s1 + $0x28] sm:$0xff] (!%p188_p2)  ;;  %vm418_vm2 = vcmask (!%p188_p2), 1045504   ;;  %vm548_vm3 = vcmask (!%p188_p2), 916480  }
   0x7   : > { %v1195_v5 = vpack.c.bf16 (!%p188_p2), %v230_v4, %v229_v2  ;;  %v885_v8 = vld [vmem:[%s1611_s1 + $0x40] sm:$0xff] (!%p188_p2)  ;;  %v886_v9 = vld [vmem:[%s1611_s1 + $0x48] sm:$0xff] (!%p188_p2)  ;;  %v887_v11 = vld [vmem:[%s1611_s1 + $0x50] sm:$0xff] (!%p188_p2)  ;;  %v1199_v13 = vpack.c.bf16 (!%p188_p2), %v232_v7, %v231_v6  ;;  %vm819_vm4 = vcmask (!%p188_p2), 781312   ;;  %vm817_vm5 = vcmask (!%p188_p2), 785408  }
   0x8   : > { %1192 = vmatprep.subr.bf16.mxu0 (!%p188_p2), %v1191_v3  ;;  %v1175_v10 = vpack.c.bf16 (!%p188_p2), %v886_v9, %v885_v8  ;;  %v888_v12 = vld [vmem:[%s1611_s1 + $0x58] sm:$0xff] (!%p188_p2)  ;;  %v889_v15 = vld [vmem:[%s1611_s1 + $0x60] sm:$0xff] (!%p188_p2)  ;;  %v890_v16 = vld [vmem:[%s1611_s1 + $0x68] sm:$0xff] (!%p188_p2) }
   0x9   : > { %1194 = vmatpush3.bf16.msra.mxu0 (!%p188_p2), %v1191_v3  ;;  %v1179_v14 = vpack.c.bf16 (!%p188_p2), %v888_v12, %v887_v11  ;;  %v233_v17 = vld [vmem:[%s1611_s1 + $0x30] sm:$0xff] (!%p188_p2)  ;;  %v234_v18 = vld [vmem:[%s1611_s1 + $0x38] sm:$0xff] (!%p188_p2)  ;;  %v1183_v22 = vpack.c.bf16 (!%p188_p2), %v890_v16, %v889_v15  ;;  %v897_v27 = vld [vmem:[%s1611_s1 + $0x80] sm:$0xff] (!%p188_p2) }
   0xa   : > { %1196 = vmatprep.subr.bf16.mxu0 (!%p188_p2), %v1195_v5  ;;  %1176 = vmatprep.subr.bf16.mxu1 (!%p188_p2), %v1175_v10  ;;  %v1203_v24 = vpack.c.bf16 (!%p188_p2), %v234_v18, %v233_v17  ;;  %v891_v25 = vld [vmem:[%s1611_s1 + $0x70] sm:$0xff] (!%p188_p2)  ;;  %v892_v26 = vld [vmem:[%s1611_s1 + $0x78] sm:$0xff] (!%p188_p2)  ;;  %v898_v28 = vld [vmem:[%s1611_s1 + $0x88] sm:$0xff] (!%p188_p2) }
   0xb   : > { %1178 = vmatpush3.bf16.msra.mxu1 (!%p188_p2), %v1175_v10  ;;  %v1187_v30 = vpack.c.bf16 (!%p188_p2), %v892_v26, %v891_v25  ;;  %v1207_v32 = vpack.c.bf16 (!%p188_p2), %v898_v28, %v897_v27  ;;  %v899_v34 = vld [vmem:[%s1611_s1 + $0x90] sm:$0xff] (!%p188_p2)  ;;  %v900_v35 = vld [vmem:[%s1611_s1 + $0x98] sm:$0xff] (!%p188_p2)  ;;  %v514_v36 = vld [vmem:[%s1613_s3] sm:$0xff] (!%p188_p2) }
   0xc   : > { %1180 = vmatprep.subr.bf16.mxu1 (!%p188_p2), %v1179_v14  ;;  %v515_v37 = vld [vmem:[%s1613_s3 + $0x8] sm:$0xff] (!%p188_p2)  ;;  %v1211_v38 = vpack.c.bf16 (!%p188_p2), %v900_v35, %v899_v34  ;;  %v516_v41 = vld [vmem:[%s1613_s3 + $0x10] sm:$0xff] (!%p188_p2)  ;;  %v517_v42 = vld [vmem:[%s1613_s3 + $0x18] sm:$0xff] (!%p188_p2) }
   0xd   : > { %s1617_s19 = smov (!%p215_p3, %s876_s19), 1  ;;  %1198 = vmatpush3.bf16.msra.mxu0 %v1195_v5  ;;  %v1251_v40 = vpack.c.bf16 %v515_v37, %v514_v36  ;;  %v901_v43 = vld [vmem:[%s1611_s1 + $0xa0] sm:$0xff]  ;;  %v902_v44 = vld [vmem:[%s1611_s1 + $0xa8] sm:$0xff]  ;;  %v1255_v45 = vpack.c.bf16 %v517_v42, %v516_v41  ;;  %v903_v49 = vld [vmem:[%s1611_s1 + $0xb0] sm:$0xff] }
   0xe   : > { %s945_s11 = sshll.u32 %s1617_s19, 4  ;;  %1200 = vmatprep.subr.bf16.mxu0 %v1199_v13  ;;  %v1215_v46 = vpack.c.bf16 %v902_v44, %v901_v43  ;;  %v518_v47 = vld [vmem:[%s1613_s3 + $0x20] sm:$0xff]  ;;  %v519_v48 = vld [vmem:[%s1613_s3 + $0x28] sm:$0xff]  ;;  %v904_v50 = vld [vmem:[%s1611_s1 + $0xb8] sm:$0xff] }
   0xf   : > { %s219_s20 = scalar_lea.vmem %s1610_s0, %s945_s11  ;;  %1182 = vmatpush3.bf16.msra.mxu1 %v1179_v14  ;;  %v1259_v51 = vpack.c.bf16 %v519_v48, %v518_v47  ;;  %v1219_v52 = vpack.c.bf16 %v904_v50, %v903_v49  ;;  %v520_v53 = vld [vmem:[%s1613_s3 + $0x30] sm:$0xff]  ;;  %v521_v54 = vld [vmem:[%s1613_s3 + $0x38] sm:$0xff]  ;;  %v522_v59 = vld [vmem:[%s1613_s3 + $0x40] sm:$0xff]  ;;  %s224_s29 = scalar_lea.vmem %s1615_s5, %s945_s11 }
  0x10   : > { %v225_v19 = vld [vmem:[%s219_s20] sm:$0xff]  ;;  %v1420_v21 = vld [vmem:[%s219_s20 + $0x8] sm:$0xff]  ;;  %1184 = vmatprep.subr.bf16.mxu1 %v1183_v22  ;;  %v908_v55 = vld [vmem:[%s1613_s3 + $0x70] sm:$0xff]  ;;  %v1263_v57 = vpack.c.bf16 %v521_v54, %v520_v53 }
  0x11   : > { %v247_v20 = vrot.slane %v225_v19, 1  ;;  %1060 = vmatprep.mubr.msk.f32.mxu0 %vm250_vm0, %v225_v19  ;;  %v248_v23 = vrot.slane %v1420_v21, 1  ;;  %1202 = vmatpush3.bf16.msra.mxu0 %v1199_v13  ;;  %v419_v31 = vrot.slane %v225_v19, 2  ;;  %v420_v33 = vrot.slane %v1420_v21, 2  ;;  %v909_v56 = vld [vmem:[%s1613_s3 + $0x78] sm:$0xff]  ;;  %v523_v60 = vld [vmem:[%s1613_s3 + $0x48] sm:$0xff] }
  0x12   : > { %1204 = vmatprep.subr.bf16.mxu0 %v1203_v24  ;;  %v1223_v58 = vpack.c.bf16 %v909_v56, %v908_v55  ;;  %v910_v61 = vld [vmem:[%s1613_s3 + $0x80] sm:$0xff]  ;;  %v911_v62 = vld [vmem:[%s1613_s3 + $0x88] sm:$0xff]  ;;  %v1267_v63 = vpack.c.bf16 %v523_v60, %v522_v59  ;;  %v912_v1 = vld [vmem:[%s1613_s3 + $0x90] sm:$0xff] }
  0x13   : > { %v249_v29 = vsel %vm246_vm1, %v247_v20, %v248_v23  ;;  %1186 = vmatpush3.bf16.msra.mxu1 %v1183_v22  ;;  %v421_v39 = vsel %vm418_vm2, %v419_v31, %v420_v33  ;;  %v1227_v0 = vpack.c.bf16 %v911_v62, %v910_v61  ;;  %v913_v2 = vld [vmem:[%s1613_s3 + $0x98] sm:$0xff]  ;;  %v914_v4 = vld [vmem:[%s1613_s3 + $0xa0] sm:$0xff]  ;;  %v915_v5 = vld [vmem:[%s1613_s3 + $0xa8] sm:$0xff] }
  0x14   : > { %1041 = vmatprep.mubr.msk.f32.mxu1 %vm250_vm0, %v249_v29  ;;  %1188 = vmatprep.subr.bf16.mxu1 %v1187_v30  ;;  %v1231_v3 = vpack.c.bf16 %v913_v2, %v912_v1  ;;  %v1235_v6 = vpack.c.bf16 %v915_v5, %v914_v4  ;;  %v916_v7 = vld [vmem:[%s1613_s3 + $0xb0] sm:$0xff]  ;;  %v917_v8 = vld [vmem:[%s1613_s3 + $0xb8] sm:$0xff]  ;;  %v918_v13 = vld [vmem:[%s1613_s3 + $0xc0] sm:$0xff] }
  0x15   : > { %1206 = vmatpush3.bf16.msra.mxu0 %v1203_v24  ;;  %v524_v9 = vld [vmem:[%s1613_s3 + $0x50] sm:$0xff]  ;;  %v1239_v10 = vpack.c.bf16 %v917_v8, %v916_v7  ;;  %v525_v11 = vld [vmem:[%s1613_s3 + $0x58] sm:$0xff]  ;;  %v919_v14 = vld [vmem:[%s1613_s3 + $0xc8] sm:$0xff] }
  0x16   : > { %1208 = vmatprep.subr.bf16.mxu0 %v1207_v32  ;;  %v1271_v12 = vpack.c.bf16 %v525_v11, %v524_v9  ;;  %v1243_v15 = vpack.c.bf16 %v919_v14, %v918_v13  ;;  %v526_v16 = vld [vmem:[%s1613_s3 + $0x60] sm:$0xff]  ;;  %v527_v17 = vld [vmem:[%s1613_s3 + $0x68] sm:$0xff]  ;;  %v920_v19 = vld [vmem:[%s1613_s3 + $0xd0] sm:$0xff] }
  0x17   : > { %1190 = vmatpush3.bf16.msra.mxu1 %v1187_v30  ;;  %v1275_v18 = vpack.c.bf16 %v527_v17, %v526_v16  ;;  %v921_v20 = vld [vmem:[%s1613_s3 + $0xd8] sm:$0xff]  ;;  %v907_v28 = vld [vmem:[%s1612_s2] ss:$0 sm:$0xff]  ;;  %v928_v35 = vld [vmem:[%s1613_s3 + $0xf0] sm:$0xff] }
  0x18   : > { %1061 = vmatmul.mubr.msk.f32.vlgmr.msra.gmra.mrb[0].mxu0 %vm250_vm0, %v1420_v21  ;;  %1252 = vmatprep.subr.bf16.mxu1 %v1251_v40  ;;  %v926_v21 = vld [vmem:[%s1613_s3 + $0xe0] sm:$0xff]  ;;  %v1247_v22 = vpack.c.bf16 %v921_v20, %v920_v19  ;;  %v929_v36 = vld [vmem:[%s1613_s3 + $0xf8] sm:$0xff]  ;;  %v931_v44 = vld [vmem:[%s1613_s3 + $0x108] sm:$0xff] }
  0x19   : > { %1210 = vmatpush3.bf16.msra.mxu0 %v1207_v32  ;;  %1079 = vmatprep.mubr.msk.f32.mxu0 %vm250_vm0, %v421_v39  ;;  %v1283_v42 = vpack.c.bf16 %v929_v36, %v928_v35  ;;  %v930_v43 = vld [vmem:[%s1613_s3 + $0x100] sm:$0xff]  ;;  %v932_v48 = vld [vmem:[%s1613_s3 + $0x110] sm:$0xff]  ;;  %v933_v49 = vld [vmem:[%s1613_s3 + $0x118] sm:$0xff] }
  0x1a   : > { %1212 = vmatprep.subr.bf16.mxu0 %v1211_v38  ;;  %1042 = vmatmul.mubr.msk.f32.vlgmr.msra.gmra.mrb[0].mxu1 %vm250_vm0, %v248_v23  ;;  %v927_v23 = vld [vmem:[%s1613_s3 + $0xe8] sm:$0xff]  ;;  %v1287_v47 = vpack.c.bf16 %v931_v44, %v930_v43  ;;  %v1291_v50 = vpack.c.bf16 %v933_v49, %v932_v48  ;;  %v936_v54 = vld [vmem:[%s1613_s3 + $0x130] sm:$0xff]  ;;  %v937_v55 = vld [vmem:[%s1613_s3 + $0x138] sm:$0xff] }
  0x1b   : > { %1254 = vmatpush3.bf16.msra.mxu1 %v1251_v40  ;;  %v1279_v24 = vpack.c.bf16 %v927_v23, %v926_v21  ;;  %v1299_v56 = vpack.c.bf16 %v937_v55, %v936_v54 }
  0x1c   : > { %1256 = vmatprep.subr.bf16.mxu1 %v1255_v45 }
  0x1d   : > { %1214 = vmatpush3.bf16.msra.mxu0 %v1211_v38 }
  0x1e   : > { %1216 = vmatprep.subr.bf16.mxu0 %v1215_v46 }
  0x1f   : > { %1258 = vmatpush3.bf16.msra.mxu1 %v1255_v45 }
  0x20   : > { %1260 = vmatprep.subr.bf16.mxu1 %v1259_v51 }
  0x21   : > { %1218 = vmatpush3.bf16.msra.mxu0 %v1215_v46 }
  0x22   : > { %1220 = vmatprep.subr.bf16.mxu0 %v1219_v52 }
  0x23   : > { %1262 = vmatpush3.bf16.msra.mxu1 %v1259_v51  ;;  %v934_v51 = vld [vmem:[%s1613_s3 + $0x120] sm:$0xff] }
  0x24   : > { %1264 = vmatprep.subr.bf16.mxu1 %v1263_v57 }
  0x25   : > { %1222 = vmatpush3.bf16.msra.mxu0 %v1219_v52  ;;  %v935_v52 = vld [vmem:[%s1613_s3 + $0x128] sm:$0xff] }
  0x26   : > { %1224 = vmatprep.subr.bf16.mxu0 %v1223_v58  ;;  %v1295_v53 = vpack.c.bf16 %v935_v52, %v934_v51 }
  0x27   : > { %1266 = vmatpush3.bf16.msra.mxu1 %v1263_v57  ;;  %v938_v57 = vld [vmem:[%s1613_s3 + $0x140] sm:$0xff] }
  0x28   : > { %1080 = vmatmul.mubr.msk.f32.vlgmr.msra.gmra.mrb[0].mxu0 %vm250_vm0, %v420_v33  ;;  %1268 = vmatprep.subr.bf16.mxu1 %v1267_v63 }
  0x29   : > { %1226 = vmatpush3.bf16.msra.mxu0 %v1223_v58  ;;  %v939_v58 = vld [vmem:[%s1613_s3 + $0x148] sm:$0xff] }
  0x2a   : > { %1228 = vmatprep.subr.bf16.mxu0 %v1227_v0  ;;  %v1303_v59 = vpack.c.bf16 %v939_v58, %v938_v57 }
  0x2b   : > { %1270 = vmatpush3.bf16.msra.mxu1 %v1267_v63  ;;  %v942_v63 = vld [vmem:[%s1614_s4] ss:$0 sm:$0xff] }
  0x2c   : > { %1272 = vmatprep.subr.bf16.mxu1 %v1271_v12 }
  0x2d   : > { %1230 = vmatpush3.bf16.msra.mxu0 %v1227_v0 }
  0x2e   : > { %1232 = vmatprep.subr.bf16.mxu0 %v1231_v3 }
  0x2f   : > { %1274 = vmatpush3.bf16.msra.mxu1 %v1271_v12 }
  0x30   : > { %1276 = vmatprep.subr.bf16.mxu1 %v1275_v18 }
  0x31   : > { %1234 = vmatpush3.bf16.msra.mxu0 %v1231_v3 }
  0x32   : > { %1236 = vmatprep.subr.bf16.mxu0 %v1235_v6 }
  0x33   : > { %1278 = vmatpush3.bf16.msra.mxu1 %v1275_v18 }
  0x34   : > { %1280 = vmatprep.subr.bf16.mxu1 %v1279_v24 }
  0x35   : > { %1238 = vmatpush3.bf16.msra.mxu0 %v1235_v6 }
  0x36   : > { %1240 = vmatprep.subr.bf16.mxu0 %v1239_v10 }
  0x39   : > { %1242 = vmatpush3.bf16.msra.mxu0 %v1239_v10 }
  0x3a   : > { %1244 = vmatprep.subr.bf16.mxu0 %v1243_v15 }
  0x3d   : > { %1246 = vmatpush3.bf16.msra.mxu0 %v1243_v15 }
  0x3e   : > { %1248 = vmatprep.subr.bf16.mxu0 %v1247_v22 }
  0x41   : > { %1250 = vmatpush3.bf16.msra.mxu0 %v1247_v22 }
  0xed   : > { %v1043_v25 = vpop.f32.mrb[0].mxu1 }
  0xee   : > { %v321_v26 = vpop.f32.mrb[1].mxu1 }
  0xfb   : > { %v1081_v27 = vpop.f32.mrb[0].mxu0 }
  0xfc   : > { %v1307_v29 = vadd.f32 %v1081_v27, %v1043_v25  ;;  %v492_v30 = vpop.f32.mrb[1].mxu0 }
  0xfd   : > { %v1308_v31 = vadd.f32 %v492_v30, %v321_v26 }
  0xfe   : > { %v511_v32 = vadd.f32 %v1307_v29, %v907_v28 }
  0xff   : > { %v510_v33 = vadd.f32 %v1308_v31, %v907_v28 }
 0x100   : > { %v513_v34 = vmax.f32 %v511_v32, 0.0 }
 0x101   : > { %v512_v37 = vmax.f32 %v510_v33, 0.0 }
 0x102   : > { %v546_v38 = vrot.slane %v513_v34, 1  ;;  %v723_v39 = vrot.slane %v513_v34, 2 }
 0x103   : > { %v545_v40 = vrot.slane %v512_v37, 1  ;;  %v722_v41 = vrot.slane %v512_v37, 2  ;;  %1141 = vmatprep.mubr.msk.f32.mxu1 %vm548_vm3, %v512_v37 }
 0x104   : > { %1142 = vmatmul.mubr.msk.f32.vlgmr.msra.gmra.mrb[2].mxu1 %vm548_vm3, %v513_v34 }
 0x105   : > { %1282 = vmatpush3.bf16.msra.mxu1 %v1279_v24  ;;  %v547_v45 = vsel %vm246_vm1, %v545_v40, %v546_v38  ;;  %v724_v46 = vsel %vm418_vm2, %v722_v41, %v723_v39 }
 0x106   : > { %1110 = vmatprep.mubr.msk.f32.mxu0 %vm548_vm3, %v547_v45  ;;  %1172 = vmatprep.mubr.msk.f32.mxu1 %vm548_vm3, %v724_v46 }
 0x107   : > { %1111 = vmatmul.mubr.msk.f32.vlgmr.msra.gmra.mrb[2].mxu0 %vm548_vm3, %v546_v38  ;;  %1284 = vmatprep.subr.bf16.mxu1 %v1283_v42 }
 0x109   : > { %1286 = vmatpush3.bf16.msra.mxu1 %v1283_v42 }
 0x10a   : > { %1288 = vmatprep.subr.bf16.mxu1 %v1287_v47 }
 0x10d   : > { %1290 = vmatpush3.bf16.msra.mxu1 %v1287_v47 }
 0x10e   : > { %1292 = vmatprep.subr.bf16.mxu1 %v1291_v50 }
 0x111   : > { %1294 = vmatpush3.bf16.msra.mxu1 %v1291_v50 }
 0x112   : > { %1296 = vmatprep.subr.bf16.mxu1 %v1295_v53 }
 0x115   : > { %1298 = vmatpush3.bf16.msra.mxu1 %v1295_v53 }
 0x116   : > { %1300 = vmatprep.subr.bf16.mxu1 %v1299_v56 }
 0x119   : > { %1302 = vmatpush3.bf16.msra.mxu1 %v1299_v56 }
 0x11a   : > { %1304 = vmatprep.subr.bf16.mxu1 %v1303_v59 }
 0x11d   : > { %1306 = vmatpush3.bf16.msra.mxu1 %v1303_v59 }
 0x120   : > { %1173 = vmatmul.mubr.msk.f32.vlgmr.msra.gmra.mrb[2].mxu1 %vm548_vm3, %v723_v39 }
 0x1da   : > { %v1112_v60 = vpop.f32.mrb[2].mxu0 }
 0x1db   : > { %v619_v61 = vpop.f32.mrb[3].mxu0 }
 0x1f3   : > { %v1174_v62 = vpop.f32.mrb[2].mxu1 }
 0x1f4   : > { %v1309_v0 = vadd.f32 %v1174_v62, %v1112_v60  ;;  %v795_v1 = vpop.f32.mrb[3].mxu1 }
 0x1f5   : > { %v1310_v2 = vadd.f32 %v795_v1, %v619_v61 }
 0x1f6   : > { %v814_v3 = vadd.f32 %v1309_v0, %v942_v63 }
 0x1f7   : > { %v813_v4 = vadd.f32 %v1310_v2, %v942_v63 }
 0x1f8   : > { %v816_v5 = vmax.f32 %v814_v3, 0.0 }
 0x1f9   : > { %v815_v6 = vmax.f32 %v813_v4, 0.0 }
 0x1fa   : > { %820 = vst.msk [vmem:[%s224_s29 + $0x8] sm:$0xf] %vm819_vm4, %v816_v5 }
 0x1fb   : > { %818 = vst.msk [vmem:[%s224_s29] sm:$0xff] %vm817_vm5, %v815_v6 }
 0x1fc PF: > { %s15_s18 = sadd.s32 1, %s1329_s18  }
 0x1fd   : > { %p12_p4 = scmp.ge.s32.totalorder %s15_s18, 4  }
 0x1ff   :  { %14 = sbr.rel (!%p12_p4) target bundleno = 1 (0x1), region = 74 }

</bundles_post_ra>
